<compile_context>
chip_gen: v6e
topology: v6e:2x2x1
jax: 0.10.0
libtpu: 0.0.40
codegen_flags: <defaults>
</compile_context>

<pallas_src>
import jax
import jax.numpy as jnp
from jax.experimental import pallas as pl
from jax.experimental.pallas import tpu as pltpu

IN_F = 28 * 28          # 784
K_PAD = 896             # 7 * 128
H1 = 128
H2 = 64
H2_PAD = 128
OUT = 10
OUT_PAD = 128


def _round_up(x, m):
    return (x + m - 1) // m * m


def mlp_kernel(x_ref, w1_ref, b1_ref, w2_ref, b2_ref, w3_ref, b3_ref, o_ref):
    # Weights arrive already in the compute dtype (f32 or bf16); biases/accumulation stay f32.
    cd = w1_ref.dtype
    x = x_ref[...].astype(cd)

    h1 = jnp.dot(x, w1_ref[...], preferred_element_type=jnp.float32) + b1_ref[...]
    h1 = jnp.maximum(h1, 0.0)

    h2 = jnp.dot(h1.astype(cd), w2_ref[...], preferred_element_type=jnp.float32) + b2_ref[...]
    h2 = jnp.maximum(h2, 0.0)

    h3 = jnp.dot(h2.astype(cd), w3_ref[...], preferred_element_type=jnp.float32) + b3_ref[...]
    o_ref[...] = h3.astype(o_ref.dtype)


def simple_nn_forward(x, params, *, compute_dtype=jnp.float32, block_b=1024):
    """x: any shape flattening to (B, 784) (e.g. (B, 1, 28, 28)). Returns (B, 10) f32.

    compute_dtype: dtype of the MXU operands (jnp.float32 or jnp.bfloat16).
    block_b:       max rows per batch tile (multiple of 8; keeps double-buffered tiles small).
    """
    w1, b1, w2, b2, w3, b3 = params  # stored as (in, out) so the kernel computes x @ W + b
    x2d = x.reshape(-1, IN_F)
    B = x2d.shape[0]

    # Batch tile: multiple of 8 sublanes, capped so double-buffered x tiles stay well under VMEM.
    TB = min(_round_up(block_b, 8), _round_up(B, 8))
    B_pad = _round_up(B, TB)
    grid = (B_pad // TB,)

    # One-time wrapper-side zero padding (lane-dense dims + ragged batch tail).
    xp = jnp.pad(x2d, ((0, B_pad - B), (0, K_PAD - IN_F))).astype(compute_dtype)
    w1p = jnp.pad(w1, ((0, K_PAD - IN_F), (0, 0))).astype(compute_dtype)
    b1p = b1.astype(jnp.float32)                                        # (1, 128)
    w2p = jnp.pad(w2, ((0, 0), (0, H2_PAD - H2))).astype(compute_dtype)
    b2p = jnp.pad(b2, ((0, 0), (0, H2_PAD - H2))).astype(jnp.float32)
    w3p = jnp.pad(w3, ((0, H2_PAD - H2), (0, OUT_PAD - OUT))).astype(compute_dtype)
    b3p = jnp.pad(b3, ((0, 0), (0, OUT_PAD - OUT))).astype(jnp.float32)

    # Constant index_map -> the block never changes, so it stays VMEM-resident across grid steps.
    resident = lambda shape: pl.BlockSpec(shape, lambda i: (0, 0))

    flops = 2 * B_pad * (K_PAD * H1 + H1 * H2_PAD + H2_PAD * OUT_PAD)
    bytes_accessed = (
        xp.size * xp.dtype.itemsize
        + sum(a.size * a.dtype.itemsize for a in (w1p, b1p, w2p, b2p, w3p, b3p))
        + B_pad * OUT_PAD * 4
    )

    out = pl.pallas_call(
        mlp_kernel,
        out_shape=jax.ShapeDtypeStruct((B_pad, OUT_PAD), jnp.float32),
        grid_spec=pl.GridSpec(
            grid=grid,
            in_specs=[
                pl.BlockSpec((TB, K_PAD), lambda i: (i, 0)),            # x: streamed per batch tile
                resident((K_PAD, H1)), resident((1, H1)),
                resident((H1, H2_PAD)), resident((1, H2_PAD)),
                resident((H2_PAD, OUT_PAD)), resident((1, OUT_PAD)),
            ],
            out_specs=pl.BlockSpec((TB, OUT_PAD), lambda i: (i, 0)),
        ),
        compiler_params=pltpu.CompilerParams(
            dimension_semantics=("parallel",),                          # megacore split on v7x
        ),
        cost_estimate=pl.CostEstimate(
            flops=flops, transcendentals=0, bytes_accessed=bytes_accessed
        ),
    )(xp, w1p, b1p, w2p, b2p, w3p, b3p)

    return out[:B, :OUT]


def init_params(key):
    """Deterministic init mimicking nn.Linear's uniform(-1/sqrt(fan_in), 1/sqrt(fan_in))."""
    def linear_init(k, fan_in, fan_out):
        kw, kb = jax.random.split(k)
        bound = 1.0 / jnp.sqrt(fan_in)
        w = jax.random.uniform(kw, (fan_in, fan_out), jnp.float32, -bound, bound)
        b = jax.random.uniform(kb, (1, fan_out), jnp.float32, -bound, bound)
        return w, b

    k1, k2, k3 = jax.random.split(key, 3)
    w1, b1 = linear_init(k1, IN_F, H1)
    w2, b2 = linear_init(k2, H1, H2)
    w3, b3 = linear_init(k3, H2, OUT)
    return (w1, b1, w2, b2, w3, b3)


def _reference_forward(x, params):
    w1, b1, w2, b2, w3, b3 = params
    x2d = x.reshape(-1, IN_F)
    h1 = jnp.maximum(x2d @ w1 + b1, 0.0)
    h2 = jnp.maximum(h1 @ w2 + b2, 0.0)
    return h2 @ w3 + b3


if __name__ == "__main__":
    key = jax.random.PRNGKey(0)
    k_params, k_x = jax.random.split(key)

    params = init_params(k_params)
    # small MNIST-like batch: (B, 1, 28, 28), flattens to (B, 784)
    x = jax.random.normal(k_x, (2, 1, 28, 28), dtype=jnp.float32)

    ref = _reference_forward(x, params)

    # f32 MXU operands: bit-accurate path (matches PyTorch f32 semantics).
    out_f32 = jax.block_until_ready(simple_nn_forward(x, params, compute_dtype=jnp.float32))
    assert out_f32.shape == (2, OUT)
    assert jnp.allclose(out_f32, ref, atol=1e-4, rtol=1e-4)

    # bf16 MXU operands (recommended on v6e/v7x): f32 accumulation, slightly looser tolerance.
    out_bf16 = jax.block_until_ready(simple_nn_forward(x, params, compute_dtype=jnp.bfloat16))
    assert out_bf16.shape == (2, OUT)
    assert jnp.allclose(out_bf16, ref, atol=5e-2, rtol=5e-2)

    print("KERNEL_OK")
</pallas_src>

<mosaic_0001>
module attributes {stable_mosaic.version = 11 : i64} {
  func.func @mlp_kernel(%arg0: i32, %arg1: memref<8x896xf32, #tpu.memory_space<vmem>>, %arg2: memref<896x128xf32, #tpu.memory_space<vmem>>, %arg3: memref<1x128xf32, #tpu.memory_space<vmem>>, %arg4: memref<128x128xf32, #tpu.memory_space<vmem>>, %arg5: memref<1x128xf32, #tpu.memory_space<vmem>>, %arg6: memref<128x128xf32, #tpu.memory_space<vmem>>, %arg7: memref<1x128xf32, #tpu.memory_space<vmem>>, %arg8: memref<8x128xf32, #tpu.memory_space<vmem>>) attributes {dimension_semantics = [#tpu.dimension_semantics<parallel>], iteration_bounds = array<i64: 1>, scalar_prefetch = 0 : i64, scratch_operands = 0 : i64, tpu.core_type = #tpu.core_type<tc>, window_params = [{transform_indices = @transform_0, window_bounds = array<i64: 8, 896>}, {pipeline_mode = #tpu.pipeline_mode<synchronous>, transform_indices = @transform_1, window_bounds = array<i64: 896, 128>}, {pipeline_mode = #tpu.pipeline_mode<synchronous>, transform_indices = @transform_2, window_bounds = array<i64: 1, 128>}, {pipeline_mode = #tpu.pipeline_mode<synchronous>, transform_indices = @transform_3, window_bounds = array<i64: 128, 128>}, {pipeline_mode = #tpu.pipeline_mode<synchronous>, transform_indices = @transform_4, window_bounds = array<i64: 1, 128>}, {pipeline_mode = #tpu.pipeline_mode<synchronous>, transform_indices = @transform_5, window_bounds = array<i64: 128, 128>}, {pipeline_mode = #tpu.pipeline_mode<synchronous>, transform_indices = @transform_6, window_bounds = array<i64: 1, 128>}, {transform_indices = @transform_7, window_bounds = array<i64: 8, 128>}]} {
    %c0 = arith.constant 0 : index
    %c0_0 = arith.constant 0 : index
    %0 = vector.load %arg1[%c0, %c0_0] : memref<8x896xf32, #tpu.memory_space<vmem>>, vector<8x896xf32>
    %c0_1 = arith.constant 0 : index
    %c0_2 = arith.constant 0 : index
    %1 = vector.load %arg2[%c0_1, %c0_2] : memref<896x128xf32, #tpu.memory_space<vmem>>, vector<896x128xf32>
    %cst = arith.constant dense<0.000000e+00> : vector<8x128xf32>
    %2 = tpu.matmul %0, %1, %cst {dimension_numbers = #tpu.dot_dimension_numbers<[1], [0], [0], [1], [0, 0, 1, 1], [], []>} : vector<8x896xf32>, vector<896x128xf32>, vector<8x128xf32> -> vector<8x128xf32>
    %c0_3 = arith.constant 0 : index
    %c0_4 = arith.constant 0 : index
    %3 = vector.load %arg3[%c0_3, %c0_4] : memref<1x128xf32, #tpu.memory_space<vmem>>, vector<1x128xf32>
    %4 = vector.broadcast %3 : vector<1x128xf32> to vector<8x128xf32>
    %5 = arith.addf %2, %4 : vector<8x128xf32>
    %cst_5 = arith.constant 0.000000e+00 : f32
    %6 = vector.broadcast %cst_5 : f32 to vector<8x128xf32>
    %7 = arith.maximumf %5, %6 : vector<8x128xf32>
    %c0_6 = arith.constant 0 : index
    %c0_7 = arith.constant 0 : index
    %8 = vector.load %arg4[%c0_6, %c0_7] : memref<128x128xf32, #tpu.memory_space<vmem>>, vector<128x128xf32>
    %cst_8 = arith.constant dense<0.000000e+00> : vector<8x128xf32>
    %9 = tpu.matmul %7, %8, %cst_8 {dimension_numbers = #tpu.dot_dimension_numbers<[1], [0], [0], [1], [0, 0, 1, 1], [], []>} : vector<8x128xf32>, vector<128x128xf32>, vector<8x128xf32> -> vector<8x128xf32>
    %c0_9 = arith.constant 0 : index
    %c0_10 = arith.constant 0 : index
    %10 = vector.load %arg5[%c0_9, %c0_10] : memref<1x128xf32, #tpu.memory_space<vmem>>, vector<1x128xf32>
    %11 = vector.broadcast %10 : vector<1x128xf32> to vector<8x128xf32>
    %12 = arith.addf %9, %11 : vector<8x128xf32>
    %cst_11 = arith.constant 0.000000e+00 : f32
    %13 = vector.broadcast %cst_11 : f32 to vector<8x128xf32>
    %14 = arith.maximumf %12, %13 : vector<8x128xf32>
    %c0_12 = arith.constant 0 : index
    %c0_13 = arith.constant 0 : index
    %15 = vector.load %arg6[%c0_12, %c0_13] : memref<128x128xf32, #tpu.memory_space<vmem>>, vector<128x128xf32>
    %cst_14 = arith.constant dense<0.000000e+00> : vector<8x128xf32>
    %16 = tpu.matmul %14, %15, %cst_14 {dimension_numbers = #tpu.dot_dimension_numbers<[1], [0], [0], [1], [0, 0, 1, 1], [], []>} : vector<8x128xf32>, vector<128x128xf32>, vector<8x128xf32> -> vector<8x128xf32>
    %c0_15 = arith.constant 0 : index
    %c0_16 = arith.constant 0 : index
    %17 = vector.load %arg7[%c0_15, %c0_16] : memref<1x128xf32, #tpu.memory_space<vmem>>, vector<1x128xf32>
    %18 = vector.broadcast %17 : vector<1x128xf32> to vector<8x128xf32>
    %19 = arith.addf %16, %18 : vector<8x128xf32>
    %c0_17 = arith.constant 0 : index
    %c0_18 = arith.constant 0 : index
    %20 = vector.load %arg8[%c0_17, %c0_18] : memref<8x128xf32, #tpu.memory_space<vmem>>, vector<8x128xf32>
    tpu.vector_store %arg8[%c0_17, %c0_18], %19 {strides = array<i32>} : memref<8x128xf32, #tpu.memory_space<vmem>>, vector<8x128xf32>,
    return
  }
  func.func @transform_0(%arg0: i32) -> (i32, i32) {
    %c0_i32 = arith.constant 0 : i32
    %c0_i32_0 = arith.constant 0 : i32
    return %arg0, %c0_i32 : i32, i32
  }
  func.func @transform_1(%arg0: i32) -> (i32, i32) {
    %c0_i32 = arith.constant 0 : i32
    %c0_i32_0 = arith.constant 0 : i32
    %c0_i32_1 = arith.constant 0 : i32
    return %c0_i32, %c0_i32_0 : i32, i32
  }
  func.func @transform_2(%arg0: i32) -> (i32, i32) {
    %c0_i32 = arith.constant 0 : i32
    %c0_i32_0 = arith.constant 0 : i32
    %c0_i32_1 = arith.constant 0 : i32
    return %c0_i32, %c0_i32_0 : i32, i32
  }
  func.func @transform_3(%arg0: i32) -> (i32, i32) {
    %c0_i32 = arith.constant 0 : i32
    %c0_i32_0 = arith.constant 0 : i32
    %c0_i32_1 = arith.constant 0 : i32
    return %c0_i32, %c0_i32_0 : i32, i32
  }
  func.func @transform_4(%arg0: i32) -> (i32, i32) {
    %c0_i32 = arith.constant 0 : i32
    %c0_i32_0 = arith.constant 0 : i32
    %c0_i32_1 = arith.constant 0 : i32
    return %c0_i32, %c0_i32_0 : i32, i32
  }
  func.func @transform_5(%arg0: i32) -> (i32, i32) {
    %c0_i32 = arith.constant 0 : i32
    %c0_i32_0 = arith.constant 0 : i32
    %c0_i32_1 = arith.constant 0 : i32
    return %c0_i32, %c0_i32_0 : i32, i32
  }
  func.func @transform_6(%arg0: i32) -> (i32, i32) {
    %c0_i32 = arith.constant 0 : i32
    %c0_i32_0 = arith.constant 0 : i32
    %c0_i32_1 = arith.constant 0 : i32
    return %c0_i32, %c0_i32_0 : i32, i32
  }
  func.func @transform_7(%arg0: i32) -> (i32, i32) {
    %c0_i32 = arith.constant 0 : i32
    %c0_i32_0 = arith.constant 0 : i32
    return %arg0, %c0_i32 : i32, i32
  }
}

</mosaic_0001>

<bundles_post_ra>
// kernel: tpu_custom_call.1
= control target key start
LH: loop header
LB: loop body
LE: loop exit
PB: predicated region body
PF: predicated region fallthrough
CT: control target
= control target key end

     0   :  { %12 = vsyncpa [#allocation3], 0  ;;  %s1206_s0 = inlined_call_operand.hbm [shape: f32[8,896], index: 0, kind: input, shape index: {}]   ;;  %s1207_s1 = inlined_call_operand.hbm [shape: f32[896,128], index: 1, kind: input, shape index: {}]   ;;  %s1208_s2 = inlined_call_operand.vmem [shape: f32[1,128], index: 2, kind: input, shape index: {}]   ;;  %s1209_s3 = inlined_call_operand.hbm [shape: f32[128,128], index: 3, kind: input, shape index: {}]   ;;  %s1210_s4 = inlined_call_operand.vmem [shape: f32[1,128], index: 4, kind: input, shape index: {}]   ;;  %s1211_s5 = inlined_call_operand.hbm [shape: f32[128,128], index: 5, kind: input, shape index: {}]   ;;  %s1212_s6 = inlined_call_operand.vmem [shape: f32[1,128], index: 6, kind: input, shape index: {}]   ;;  %s1213_s7 = inlined_call_operand.hbm [shape: f32[8,128], index: 7, kind: output, shape index: {}]  }
   0x1   :  { %13 = vsyncpa [#allocation6], 0 }
   0x2   :  { %14 = vsyncpa [#allocation9], 0 }
   0x3   :  { %15 = vsyncpa [#allocation4], 0  ;;  %s1073_s24 = smov [#allocation5]  }
   0x4   :  { %s31_s25 = sshll.u32 %s1073_s24, 4  ;;  %s32_s25 = int_to_ptr.vmem [resolvable:$true] %s31_s25 }
   0x5   :  { %s973_s26 = scalar_lea.vmem %s32_s25, 14336  ;;  %p978_p1 = scmp.lt.s32.totalorder %s32_s25, %s32_s25 }
   0x6   :  { %p974_p0 = scmp.ne.s32.totalorder %s32_s25, %s973_s26  ;;  %p979_p2 = scmp.lt.s32.totalorder %s973_s26, %s973_s26 }
   0x8   :  { %p980_p3 = por %p979_p2, %p978_p1 }
   0xa   :  { %p981_p4 = pnand %p980_p3, %p974_p0 }
   0xc   :  { %984 = shalt.err (!%p981_p4)
}
   0xd   :  { %s1074_s27 = smov 128   ;;  %s1075_s28 = smov 8  }
   0xe   :  { %37 = dma.hbm_to_vmem [thread:$0]  %s1207_s1, 14336, %s32_s25, [#allocation6], %s1074_s27, %s1074_s27, %s1075_s28  }
   0xf   :  { %s1076_s8 = smov [#allocation2]   ;;  %s1077_s10 = smov [#allocation7]  }
  0x10   :  { %s22_s9 = sshll.u32 %s1076_s8, 4  ;;  %s45_s11 = sshll.u32 %s1077_s10, 4  ;;  %s23_s9 = int_to_ptr.vmem [resolvable:$true] %s22_s9  ;;  %s46_s11 = int_to_ptr.vmem [resolvable:$true] %s45_s11 }
  0x11   :  { %s993_s12 = scalar_lea.vmem %s23_s9, 896  ;;  %p998_p6 = scmp.lt.s32.totalorder %s23_s9, %s23_s9 }
  0x12   :  { %p994_p5 = scmp.ne.s32.totalorder %s23_s9, %s993_s12  ;;  %p999_p7 = scmp.lt.s32.totalorder %s993_s12, %s993_s12 }
  0x14   :  { %p1000_p8 = por %p999_p7, %p998_p6 }
  0x16   :  { %p1001_p9 = pnand %p1000_p8, %p994_p5 }
  0x18   :  { %1004 = shalt.err (!%p1001_p9)
}
  0x19   :  { %25 = dma.hbm_to_vmem [thread:$0]  %s1206_s0, 896, %s23_s9, [#allocation3]  }
  0x1a   :  { %s1013_s15 = scalar_lea.vmem %s46_s11, 2048  ;;  %p1018_p11 = scmp.lt.s32.totalorder %s46_s11, %s46_s11 }
  0x1b   :  { %p1014_p10 = scmp.ne.s32.totalorder %s46_s11, %s1013_s15  ;;  %p1019_p12 = scmp.lt.s32.totalorder %s1013_s15, %s1013_s15 }
  0x1d   :  { %p1020_p13 = por %p1019_p12, %p1018_p11 }
  0x1f   :  { %p1021_p0 = pnand %p1020_p13, %p1014_p10 }
  0x21   :  { %1024 = shalt.err (!%p1021_p0)
}
  0x22   :  { %51 = dma.hbm_to_vmem [thread:$0]  %s1209_s3, 2048, %s46_s11, [#allocation6], %s1074_s27, %s1074_s27, %s1075_s28  }
  0x23   :  { %s1078_s17 = smov [#allocation8]  }
  0x24   :  { %s59_s18 = sshll.u32 %s1078_s17, 4  ;;  %s60_s18 = int_to_ptr.vmem [resolvable:$true] %s59_s18 }
  0x25   :  { %s1033_s19 = scalar_lea.vmem %s60_s18, 2048  ;;  %p1038_p2 = scmp.lt.s32.totalorder %s60_s18, %s60_s18 }
  0x26   :  { %p1034_p1 = scmp.ne.s32.totalorder %s60_s18, %s1033_s19  ;;  %p1039_p3 = scmp.lt.s32.totalorder %s1033_s19, %s1033_s19 }
  0x28   :  { %p1040_p4 = por %p1039_p3, %p1038_p2 }
  0x2a   :  { %p1041_p5 = pnand %p1040_p4, %p1034_p1 }
  0x2c   :  { %1044 = shalt.err (!%p1041_p5)
}
  0x2d   :  { %65 = dma.hbm_to_vmem [thread:$0]  %s1211_s5, 2048, %s60_s18, [#allocation9], %s1074_s27, %s1074_s27, %s1075_s28  }
  0x2e   :  { %1065 = dma.done.wait [#allocation3], 896  }
  0x2f   :  { %1066 = vsyncadd [#allocation3], 4294966400 }
  0x30   :  { %1067 = dma.done.wait [#allocation6], 16384  }
  0x31   :  { %1068 = vsyncadd [#allocation6], 4294950912 }
  0x32   :  { %1069 = dma.done.wait [#allocation9], 2048  }
  0x33   :  { %1070 = vsyncadd [#allocation9], 4294965248  ;;  %v118_v0 = vld [vmem:[#allocation5 + $0xf8] sm:$0xff]  ;;  %v117_v2 = vld [vmem:[#allocation5 + $0xf0] sm:$0xff]  ;;  %vm1080_vm0 = vmmov 0   ;;  %s1081_s24 = smov [#allocation10]  }
  0x34   :  { %v102_v1 = vld [vmem:[#allocation5 + $0x78] sm:$0xff]  ;;  %695 = vmatprep.subr.mxu0 %v118_v0  ;;  %v101_v4 = vld [vmem:[#allocation5 + $0x70] sm:$0xff]  ;;  %v116_v6 = vld [vmem:[#allocation5 + $0xe8] sm:$0xff]  ;;  %s681_s25 = sshll.u32 %s1081_s24, 4  ;;  %s682_s25 = int_to_ptr.vmem [resolvable:$true] %s681_s25 }
  0x35   :  { %v150_v3 = vld [vmem:[#allocation5 + $0x1f8] sm:$0xff]  ;;  %696 = vmatpush3.msra.mxu0 %v102_v1  ;;  %v149_v7 = vld [vmem:[#allocation5 + $0x1f0] sm:$0xff]  ;;  %v100_v8 = vld [vmem:[#allocation5 + $0x68] sm:$0xff]  ;;  %s1045_s26 = scalar_lea.vmem %s682_s25, 128  ;;  %p1050_p7 = scmp.lt.s32.totalorder %s682_s25, %s682_s25 }
  0x36   :  { %v134_v5 = vld [vmem:[#allocation5 + $0x178] sm:$0xff]  ;;  %730 = vmatprep.subr.mxu1 %v150_v3  ;;  %697 = vmatprep.subr.mxu0 %v117_v2  ;;  %v133_v9 = vld [vmem:[#allocation5 + $0x170] sm:$0xff]  ;;  %v148_v10 = vld [vmem:[#allocation5 + $0x1e8] sm:$0xff]  ;;  %p1046_p6 = scmp.ne.s32.totalorder %s682_s25, %s1045_s26  ;;  %p1051_p8 = scmp.lt.s32.totalorder %s1045_s26, %s1045_s26 }
  0x37   :  { %731 = vmatpush3.msra.mxu1 %v134_v5  ;;  %698 = vmatpush3.msra.mxu0 %v101_v4  ;;  %v115_v11 = vld [vmem:[#allocation5 + $0xe0] sm:$0xff]  ;;  %v132_v12 = vld [vmem:[#allocation5 + $0x168] sm:$0xff]  ;;  %v114_v15 = vld [vmem:[#allocation5 + $0xd8] sm:$0xff] }
  0x38   :  { %732 = vmatprep.subr.mxu1 %v149_v7  ;;  %699 = vmatprep.subr.mxu0 %v116_v6  ;;  %v99_v13 = vld [vmem:[#allocation5 + $0x60] sm:$0xff]  ;;  %v98_v17 = vld [vmem:[#allocation5 + $0x58] sm:$0xff]  ;;  %v113_v19 = vld [vmem:[#allocation5 + $0xd0] sm:$0xff]  ;;  %p1052_p9 = por %p1051_p8, %p1050_p7 }
  0x39   :  { %733 = vmatpush3.msra.mxu1 %v133_v9  ;;  %v147_v14 = vld [vmem:[#allocation5 + $0x1e0] sm:$0xff]  ;;  %700 = vmatpush3.msra.mxu0 %v100_v8  ;;  %v146_v18 = vld [vmem:[#allocation5 + $0x1d8] sm:$0xff]  ;;  %v97_v21 = vld [vmem:[#allocation5 + $0x50] sm:$0xff] }
  0x3a   :  { %734 = vmatprep.subr.mxu1 %v148_v10  ;;  %v131_v16 = vld [vmem:[#allocation5 + $0x160] sm:$0xff]  ;;  %701 = vmatprep.subr.mxu0 %v115_v11  ;;  %v130_v20 = vld [vmem:[#allocation5 + $0x158] sm:$0xff]  ;;  %v145_v22 = vld [vmem:[#allocation5 + $0x1d0] sm:$0xff]  ;;  %v1079_v11 = vmov 0.0   ;;  %p1053_p10 = pnand %p1052_p9, %p1046_p6 }
  0x3b   :  { %735 = vmatpush3.msra.mxu1 %v132_v12  ;;  %702 = vmatpush3.msra.mxu0 %v99_v13  ;;  %v112_v23 = vld [vmem:[#allocation5 + $0xc8] sm:$0xff]  ;;  %v129_v24 = vld [vmem:[#allocation5 + $0x150] sm:$0xff]  ;;  %v111_v27 = vld [vmem:[#allocation5 + $0xc0] sm:$0xff] }
  0x3c   :  { %736 = vmatprep.subr.mxu1 %v147_v14  ;;  %703 = vmatprep.subr.mxu0 %v114_v15  ;;  %v96_v25 = vld [vmem:[#allocation5 + $0x48] sm:$0xff]  ;;  %v95_v29 = vld [vmem:[#allocation5 + $0x40] sm:$0xff]  ;;  %v110_v31 = vld [vmem:[#allocation5 + $0xb8] sm:$0xff] }
  0x3d   :  { %737 = vmatpush3.msra.mxu1 %v131_v16  ;;  %704 = vmatpush3.msra.mxu0 %v98_v17  ;;  %v144_v26 = vld [vmem:[#allocation5 + $0x1c8] sm:$0xff]  ;;  %v143_v30 = vld [vmem:[#allocation5 + $0x1c0] sm:$0xff]  ;;  %v94_v33 = vld [vmem:[#allocation5 + $0x38] sm:$0xff] }
  0x3e   :  { %738 = vmatprep.subr.mxu1 %v146_v18  ;;  %705 = vmatprep.subr.mxu0 %v113_v19  ;;  %v128_v28 = vld [vmem:[#allocation5 + $0x148] sm:$0xff]  ;;  %v127_v32 = vld [vmem:[#allocation5 + $0x140] sm:$0xff]  ;;  %v142_v34 = vld [vmem:[#allocation5 + $0x1b8] sm:$0xff] }
  0x3f   :  { %739 = vmatpush3.msra.mxu1 %v130_v20  ;;  %706 = vmatpush3.msra.mxu0 %v97_v21  ;;  %v109_v35 = vld [vmem:[#allocation5 + $0xb0] sm:$0xff]  ;;  %v126_v36 = vld [vmem:[#allocation5 + $0x138] sm:$0xff]  ;;  %v108_v39 = vld [vmem:[#allocation5 + $0xa8] sm:$0xff] }
  0x40   :  { %740 = vmatprep.subr.mxu1 %v145_v22  ;;  %707 = vmatprep.subr.mxu0 %v112_v23  ;;  %v93_v37 = vld [vmem:[#allocation5 + $0x30] sm:$0xff]  ;;  %v92_v41 = vld [vmem:[#allocation5 + $0x28] sm:$0xff]  ;;  %v107_v43 = vld [vmem:[#allocation5 + $0xa0] sm:$0xff] }
  0x41   :  { %741 = vmatpush3.msra.mxu1 %v129_v24  ;;  %708 = vmatpush3.msra.mxu0 %v96_v25  ;;  %v141_v38 = vld [vmem:[#allocation5 + $0x1b0] sm:$0xff]  ;;  %v140_v42 = vld [vmem:[#allocation5 + $0x1a8] sm:$0xff]  ;;  %v91_v45 = vld [vmem:[#allocation5 + $0x20] sm:$0xff] }
  0x42   :  { %742 = vmatprep.subr.mxu1 %v144_v26  ;;  %709 = vmatprep.subr.mxu0 %v111_v27  ;;  %v125_v40 = vld [vmem:[#allocation5 + $0x130] sm:$0xff]  ;;  %v124_v44 = vld [vmem:[#allocation5 + $0x128] sm:$0xff]  ;;  %v139_v46 = vld [vmem:[#allocation5 + $0x1a0] sm:$0xff] }
  0x43   :  { %743 = vmatpush3.msra.mxu1 %v128_v28  ;;  %710 = vmatpush3.msra.mxu0 %v95_v29  ;;  %v106_v47 = vld [vmem:[#allocation5 + $0x98] sm:$0xff]  ;;  %v123_v48 = vld [vmem:[#allocation5 + $0x120] sm:$0xff]  ;;  %v105_v51 = vld [vmem:[#allocation5 + $0x90] sm:$0xff] }
  0x44   :  { %744 = vmatprep.subr.mxu1 %v143_v30  ;;  %711 = vmatprep.subr.mxu0 %v110_v31  ;;  %v90_v49 = vld [vmem:[#allocation5 + $0x18] sm:$0xff]  ;;  %v89_v53 = vld [vmem:[#allocation5 + $0x10] sm:$0xff]  ;;  %v104_v55 = vld [vmem:[#allocation5 + $0x88] sm:$0xff] }
  0x45   :  { %745 = vmatpush3.msra.mxu1 %v127_v32  ;;  %712 = vmatpush3.msra.mxu0 %v94_v33  ;;  %v138_v50 = vld [vmem:[#allocation5 + $0x198] sm:$0xff]  ;;  %v137_v54 = vld [vmem:[#allocation5 + $0x190] sm:$0xff]  ;;  %v88_v57 = vld [vmem:[#allocation5 + $0x8] sm:$0xff] }
  0x46   :  { %746 = vmatprep.subr.mxu1 %v142_v34  ;;  %713 = vmatprep.subr.mxu0 %v109_v35  ;;  %v122_v52 = vld [vmem:[#allocation5 + $0x118] sm:$0xff]  ;;  %v121_v56 = vld [vmem:[#allocation5 + $0x110] sm:$0xff]  ;;  %v136_v58 = vld [vmem:[#allocation5 + $0x188] sm:$0xff] }
  0x47   :  { %747 = vmatpush3.msra.mxu1 %v126_v36  ;;  %714 = vmatpush3.msra.mxu0 %v93_v37  ;;  %v103_v59 = vld [vmem:[#allocation5 + $0x80] sm:$0xff]  ;;  %v81_v60 = vld [vmem:[#allocation2 + $0x8] sm:$0xff]  ;;  %v120_v62 = vld [vmem:[#allocation5 + $0x108] sm:$0xff] }
  0x48   :  { %748 = vmatprep.subr.mxu1 %v141_v38  ;;  %715 = vmatprep.subr.mxu0 %v108_v39  ;;  %v87_v61 = vld [vmem:[#allocation5] sm:$0xff]  ;;  %v80_v63 = vld [vmem:[#allocation2] sm:$0xff]  ;;  %v182_v1 = vld [vmem:[#allocation5 + $0x2f8] sm:$0xff] }
  0x49   :  { %749 = vmatpush3.msra.mxu1 %v125_v40  ;;  %716 = vmatpush3.msra.mxu0 %v92_v41  ;;  %v135_v0 = vld [vmem:[#allocation5 + $0x180] sm:$0xff]  ;;  %v166_v4 = vld [vmem:[#allocation5 + $0x278] sm:$0xff]  ;;  %v181_v6 = vld [vmem:[#allocation5 + $0x2f0] sm:$0xff] }
  0x4a   :  { %750 = vmatprep.subr.mxu1 %v140_v42  ;;  %717 = vmatprep.subr.mxu0 %v107_v43  ;;  %v119_v2 = vld [vmem:[#allocation5 + $0x100] sm:$0xff]  ;;  %v82_v5 = vld [vmem:[#allocation2 + $0x10] sm:$0xff]  ;;  %v165_v7 = vld [vmem:[#allocation5 + $0x270] sm:$0xff] }
  0x4b   :  { %751 = vmatpush3.msra.mxu1 %v124_v44  ;;  %718 = vmatpush3.msra.mxu0 %v91_v45  ;;  %v83_v3 = vld [vmem:[#allocation2 + $0x18] sm:$0xff]  ;;  %v180_v8 = vld [vmem:[#allocation5 + $0x2e8] sm:$0xff]  ;;  %v198_v9 = vld [vmem:[#allocation5 + $0x378] sm:$0xff] }
  0x4c   :  { %752 = vmatprep.subr.mxu1 %v139_v46  ;;  %719 = vmatprep.subr.mxu0 %v106_v47  ;;  %v164_v10 = vld [vmem:[#allocation5 + $0x268] sm:$0xff]  ;;  %v179_v12 = vld [vmem:[#allocation5 + $0x2e0] sm:$0xff]  ;;  %v197_v13 = vld [vmem:[#allocation5 + $0x370] sm:$0xff] }
  0x4d   :  { %753 = vmatpush3.msra.mxu1 %v123_v48  ;;  %720 = vmatpush3.msra.mxu0 %v90_v49  ;;  %v163_v14 = vld [vmem:[#allocation5 + $0x260] sm:$0xff]  ;;  %v178_v15 = vld [vmem:[#allocation5 + $0x2d8] sm:$0xff]  ;;  %v196_v16 = vld [vmem:[#allocation5 + $0x368] sm:$0xff] }
  0x4e   :  { %754 = vmatprep.subr.mxu1 %v138_v50  ;;  %721 = vmatprep.subr.mxu0 %v105_v51  ;;  %v162_v17 = vld [vmem:[#allocation5 + $0x258] sm:$0xff]  ;;  %v177_v18 = vld [vmem:[#allocation5 + $0x2d0] sm:$0xff]  ;;  %v195_v19 = vld [vmem:[#allocation5 + $0x360] sm:$0xff] }
  0x4f   :  { %755 = vmatpush3.msra.mxu1 %v122_v52  ;;  %722 = vmatpush3.msra.mxu0 %v89_v53  ;;  %v161_v20 = vld [vmem:[#allocation5 + $0x250] sm:$0xff]  ;;  %v176_v21 = vld [vmem:[#allocation5 + $0x2c8] sm:$0xff]  ;;  %v194_v22 = vld [vmem:[#allocation5 + $0x358] sm:$0xff] }
  0x50   :  { %756 = vmatprep.subr.mxu1 %v137_v54  ;;  %723 = vmatprep.subr.mxu0 %v104_v55  ;;  %v160_v23 = vld [vmem:[#allocation5 + $0x248] sm:$0xff]  ;;  %v175_v24 = vld [vmem:[#allocation5 + $0x2c0] sm:$0xff]  ;;  %v193_v25 = vld [vmem:[#allocation5 + $0x350] sm:$0xff] }
  0x51   :  { %757 = vmatpush3.msra.mxu1 %v121_v56  ;;  %724 = vmatpush3.msra.mxu0 %v88_v57  ;;  %v159_v26 = vld [vmem:[#allocation5 + $0x240] sm:$0xff]  ;;  %v174_v27 = vld [vmem:[#allocation5 + $0x2b8] sm:$0xff]  ;;  %v192_v28 = vld [vmem:[#allocation5 + $0x348] sm:$0xff] }
  0x52   :  { %758 = vmatprep.subr.mxu1 %v136_v58  ;;  %725 = vmatprep.subr.mxu0 %v103_v59  ;;  %v158_v29 = vld [vmem:[#allocation5 + $0x238] sm:$0xff]  ;;  %v173_v30 = vld [vmem:[#allocation5 + $0x2b0] sm:$0xff]  ;;  %v191_v31 = vld [vmem:[#allocation5 + $0x340] sm:$0xff] }
  0x53   :  { %270 = vmatprep.mubr.f32.mxu0 %v81_v60  ;;  %726 = vmatpush3.msra.mxu0 %v87_v61  ;;  %v157_v32 = vld [vmem:[#allocation5 + $0x230] sm:$0xff]  ;;  %v172_v33 = vld [vmem:[#allocation5 + $0x2a8] sm:$0xff]  ;;  %v190_v34 = vld [vmem:[#allocation5 + $0x338] sm:$0xff] }
  0x54   :  { %759 = vmatpush3.msra.mxu1 %v120_v62  ;;  %271 = vmatmul.mubr.f32.vlgmr.msra.gmra.mxu0 %v80_v63  ;;  %v156_v35 = vld [vmem:[#allocation5 + $0x228] sm:$0xff]  ;;  %v171_v36 = vld [vmem:[#allocation5 + $0x2a0] sm:$0xff]  ;;  %v189_v37 = vld [vmem:[#allocation5 + $0x330] sm:$0xff] }
  0x55   :  { %760 = vmatprep.subr.mxu1 %v135_v0  ;;  %765 = vmatprep.subr.mxu0 %v182_v1  ;;  %v155_v38 = vld [vmem:[#allocation5 + $0x220] sm:$0xff]  ;;  %v170_v39 = vld [vmem:[#allocation5 + $0x298] sm:$0xff]  ;;  %v188_v40 = vld [vmem:[#allocation5 + $0x328] sm:$0xff] }
  0x56   :  { %761 = vmatpush3.msra.mxu1 %v119_v2  ;;  %340 = vmatprep.mubr.f32.mxu1 %v83_v3  ;;  %v154_v41 = vld [vmem:[#allocation5 + $0x218] sm:$0xff]  ;;  %v169_v42 = vld [vmem:[#allocation5 + $0x290] sm:$0xff]  ;;  %v187_v43 = vld [vmem:[#allocation5 + $0x320] sm:$0xff] }
  0x57   :  { %766 = vmatpush3.msra.mxu0 %v166_v4  ;;  %341 = vmatmul.mubr.f32.vlgmr.msra.gmra.mxu1 %v82_v5  ;;  %v153_v44 = vld [vmem:[#allocation5 + $0x210] sm:$0xff]  ;;  %v168_v45 = vld [vmem:[#allocation5 + $0x288] sm:$0xff]  ;;  %v186_v46 = vld [vmem:[#allocation5 + $0x318] sm:$0xff] }
  0x58   :  { %767 = vmatprep.subr.mxu0 %v181_v6  ;;  %851 = vmatprep.subr.mxu1 %v1079_v11  ;;  %v152_v47 = vld [vmem:[#allocation5 + $0x208] sm:$0xff]  ;;  %v167_v48 = vld [vmem:[#allocation5 + $0x280] sm:$0xff]  ;;  %v85_v49 = vld [vmem:[#allocation2 + $0x28] sm:$0xff] }
  0x59   :  { %768 = vmatpush3.msra.mxu0 %v165_v7  ;;  %852 = vmatpush3.msra.mxu1 %v198_v9  ;;  %v151_v50 = vld [vmem:[#allocation5 + $0x200] sm:$0xff]  ;;  %v185_v51 = vld [vmem:[#allocation5 + $0x310] sm:$0xff]  ;;  %v84_v52 = vld [vmem:[#allocation2 + $0x20] sm:$0xff] }
  0x5a   :  { %769 = vmatprep.subr.mxu0 %v180_v8  ;;  %853 = vmatprep.subr.mxu1 %v1079_v11  ;;  %v184_v53 = vld [vmem:[#allocation5 + $0x308] sm:$0xff]  ;;  %v183_v54 = vld [vmem:[#allocation5 + $0x300] sm:$0xff]  ;;  %v86_v55 = vld [vmem:[#allocation2 + $0x30] sm:$0xff] }
  0x5b   :  { %770 = vmatpush3.msra.mxu0 %v164_v10  ;;  %854 = vmatpush3.msra.mxu1 %v197_v13  ;;  %v502_v56 = vld [vmem:[#allocation7 + $0x78] sm:$0xff]  ;;  %v501_v57 = vld [vmem:[#allocation7 + $0x70] sm:$0xff]  ;;  %v500_v58 = vld [vmem:[#allocation7 + $0x68] sm:$0xff] }
  0x5c   :  { %771 = vmatprep.subr.mxu0 %v179_v12  ;;  %855 = vmatprep.subr.mxu1 %v1079_v11  ;;  %v499_v59 = vld [vmem:[#allocation7 + $0x60] sm:$0xff]  ;;  %v498_v60 = vld [vmem:[#allocation7 + $0x58] sm:$0xff]  ;;  %v497_v61 = vld [vmem:[#allocation7 + $0x50] sm:$0xff] }
  0x5d   :  { %772 = vmatpush3.msra.mxu0 %v163_v14  ;;  %856 = vmatpush3.msra.mxu1 %v196_v16  ;;  %v496_v62 = vld [vmem:[#allocation7 + $0x48] sm:$0xff]  ;;  %v495_v63 = vld [vmem:[#allocation7 + $0x40] sm:$0xff]  ;;  %v494_v0 = vld [vmem:[#allocation7 + $0x38] sm:$0xff] }
  0x5e   :  { %773 = vmatprep.subr.mxu0 %v178_v15  ;;  %857 = vmatprep.subr.mxu1 %v1079_v11  ;;  %v493_v1 = vld [vmem:[#allocation7 + $0x30] sm:$0xff]  ;;  %v492_v2 = vld [vmem:[#allocation7 + $0x28] sm:$0xff]  ;;  %v491_v3 = vld [vmem:[#allocation7 + $0x20] sm:$0xff] }
  0x5f   :  { %774 = vmatpush3.msra.mxu0 %v162_v17  ;;  %858 = vmatpush3.msra.mxu1 %v195_v19  ;;  %v490_v4 = vld [vmem:[#allocation7 + $0x18] sm:$0xff]  ;;  %v489_v5 = vld [vmem:[#allocation7 + $0x10] sm:$0xff]  ;;  %v488_v6 = vld [vmem:[#allocation7 + $0x8] sm:$0xff] }
  0x60   :  { %775 = vmatprep.subr.mxu0 %v177_v18  ;;  %859 = vmatprep.subr.mxu1 %v1079_v11  ;;  %v487_v7 = vld [vmem:[#allocation7] sm:$0xff]  ;;  %v596_v8 = vld [vmem:[#allocation8 + $0x78] sm:$0xff]  ;;  %v595_v9 = vld [vmem:[#allocation8 + $0x70] sm:$0xff] }
  0x61   :  { %776 = vmatpush3.msra.mxu0 %v161_v20  ;;  %860 = vmatpush3.msra.mxu1 %v194_v22  ;;  %v594_v10 = vld [vmem:[#allocation8 + $0x68] sm:$0xff]  ;;  %v593_v12 = vld [vmem:[#allocation8 + $0x60] sm:$0xff]  ;;  %v592_v13 = vld [vmem:[#allocation8 + $0x58] sm:$0xff] }
  0x62   :  { %777 = vmatprep.subr.mxu0 %v176_v21  ;;  %861 = vmatprep.subr.mxu1 %v1079_v11  ;;  %v591_v14 = vld [vmem:[#allocation8 + $0x50] sm:$0xff]  ;;  %v590_v15 = vld [vmem:[#allocation8 + $0x48] sm:$0xff]  ;;  %v589_v16 = vld [vmem:[#allocation8 + $0x40] sm:$0xff] }
  0x63   :  { %778 = vmatpush3.msra.mxu0 %v160_v23  ;;  %862 = vmatpush3.msra.mxu1 %v193_v25  ;;  %v588_v17 = vld [vmem:[#allocation8 + $0x38] sm:$0xff]  ;;  %v587_v18 = vld [vmem:[#allocation8 + $0x30] sm:$0xff]  ;;  %v586_v19 = vld [vmem:[#allocation8 + $0x28] sm:$0xff] }
  0x64   :  { %779 = vmatprep.subr.mxu0 %v175_v24  ;;  %863 = vmatprep.subr.mxu1 %v1079_v11  ;;  %v585_v20 = vld [vmem:[#allocation8 + $0x20] sm:$0xff]  ;;  %v584_v21 = vld [vmem:[#allocation8 + $0x18] sm:$0xff] }
  0x65   :  { %780 = vmatpush3.msra.mxu0 %v159_v26  ;;  %864 = vmatpush3.msra.mxu1 %v192_v28  ;;  %v692_v26 = vld [vmem:[%s1208_s2] ss:$0 sm:$0xff] }
  0x66   :  { %781 = vmatprep.subr.mxu0 %v174_v27  ;;  %865 = vmatprep.subr.mxu1 %v1079_v11 }
  0x67   :  { %782 = vmatpush3.msra.mxu0 %v158_v29  ;;  %866 = vmatpush3.msra.mxu1 %v191_v31 }
  0x68   :  { %783 = vmatprep.subr.mxu0 %v173_v30  ;;  %867 = vmatprep.subr.mxu1 %v1079_v11 }
  0x69   :  { %784 = vmatpush3.msra.mxu0 %v157_v32  ;;  %868 = vmatpush3.msra.mxu1 %v190_v34 }
  0x6a   :  { %785 = vmatprep.subr.mxu0 %v172_v33  ;;  %869 = vmatprep.subr.mxu1 %v1079_v11 }
  0x6b   :  { %786 = vmatpush3.msra.mxu0 %v156_v35  ;;  %870 = vmatpush3.msra.mxu1 %v189_v37 }
  0x6c   :  { %787 = vmatprep.subr.mxu0 %v171_v36  ;;  %871 = vmatprep.subr.mxu1 %v1079_v11 }
  0x6d   :  { %788 = vmatpush3.msra.mxu0 %v155_v38  ;;  %872 = vmatpush3.msra.mxu1 %v188_v40  ;;  %v582_v40 = vld [vmem:[#allocation8 + $0x8] sm:$0xff] }
  0x6e   :  { %789 = vmatprep.subr.mxu0 %v170_v39  ;;  %873 = vmatprep.subr.mxu1 %v1079_v11  ;;  %v583_v39 = vld [vmem:[#allocation8 + $0x10] sm:$0xff] }
  0x6f   :  { %790 = vmatpush3.msra.mxu0 %v154_v41  ;;  %874 = vmatpush3.msra.mxu1 %v187_v43  ;;  %v581_v41 = vld [vmem:[#allocation8] sm:$0xff] }
  0x70   :  { %791 = vmatprep.subr.mxu0 %v169_v42  ;;  %875 = vmatprep.subr.mxu1 %v1079_v11  ;;  %v693_v42 = vld [vmem:[%s1210_s4] ss:$0 sm:$0xff] }
  0x71   :  { %792 = vmatpush3.msra.mxu0 %v153_v44  ;;  %876 = vmatpush3.msra.mxu1 %v186_v46 }
  0x72   :  { %793 = vmatprep.subr.mxu0 %v168_v45  ;;  %877 = vmatprep.subr.mxu1 %v1079_v11 }
  0x73   :  { %794 = vmatpush3.msra.mxu0 %v152_v47  ;;  %410 = vmatprep.mubr.f32.mxu0 %v85_v49  ;;  %v694_v47 = vld [vmem:[%s1212_s6] ss:$0 sm:$0xff] }
  0x74   :  { %795 = vmatprep.subr.mxu0 %v167_v48  ;;  %878 = vmatpush3.msra.mxu1 %v185_v51 }
  0x75   :  { %796 = vmatpush3.msra.mxu0 %v151_v50  ;;  %879 = vmatprep.subr.mxu1 %v1079_v11 }
  0x76   :  { %411 = vmatmul.mubr.f32.vlgmr.msra.gmra.mxu0 %v84_v52  ;;  %880 = vmatpush3.msra.mxu1 %v184_v53 }
  0x77   :  { %883 = vmatprep.mubr.msk.f32.mxu1 %vm1080_vm0, %v1079_v11  ;;  %881 = vmatprep.subr.mxu1 %v1079_v11 }
  0x78   :  { %886 = vmatprep.subr.mxu0 %v1079_v11  ;;  %882 = vmatpush3.msra.mxu1 %v183_v54 }
  0x79   :  { %918 = vmatprep.mubr.msk.f32.mxu0 %vm1080_vm0, %v1079_v11  ;;  %884 = vmatmul.mubr.f32.vlgmr.msra.gmra.mxu1 %v86_v55 }
  0x7a   :  { %921 = vmatprep.subr.mxu1 %v1079_v11  ;;  %953 = vmatprep.mubr.msk.f32.mxu1 %vm1080_vm0, %v1079_v11 }
  0x7b   :  { %887 = vmatpush3.msra.mxu0 %v502_v56  ;;  %922 = vmatpush3.msra.mxu1 %v596_v8 }
  0x7c   :  { %888 = vmatprep.subr.mxu0 %v1079_v11  ;;  %923 = vmatprep.subr.mxu1 %v1079_v11 }
  0x7d   :  { %889 = vmatpush3.msra.mxu0 %v501_v57  ;;  %924 = vmatpush3.msra.mxu1 %v595_v9 }
  0x7e   :  { %890 = vmatprep.subr.mxu0 %v1079_v11  ;;  %925 = vmatprep.subr.mxu1 %v1079_v11 }
  0x7f   :  { %891 = vmatpush3.msra.mxu0 %v500_v58  ;;  %926 = vmatpush3.msra.mxu1 %v594_v10 }
  0x80   :  { %892 = vmatprep.subr.mxu0 %v1079_v11  ;;  %927 = vmatprep.subr.mxu1 %v1079_v11 }
  0x81   :  { %893 = vmatpush3.msra.mxu0 %v499_v59  ;;  %928 = vmatpush3.msra.mxu1 %v593_v12 }
  0x82   :  { %894 = vmatprep.subr.mxu0 %v1079_v11  ;;  %929 = vmatprep.subr.mxu1 %v1079_v11 }
  0x83   :  { %895 = vmatpush3.msra.mxu0 %v498_v60  ;;  %930 = vmatpush3.msra.mxu1 %v592_v13 }
  0x84   :  { %896 = vmatprep.subr.mxu0 %v1079_v11  ;;  %931 = vmatprep.subr.mxu1 %v1079_v11 }
  0x85   :  { %897 = vmatpush3.msra.mxu0 %v497_v61  ;;  %932 = vmatpush3.msra.mxu1 %v591_v14 }
  0x86   :  { %898 = vmatprep.subr.mxu0 %v1079_v11  ;;  %933 = vmatprep.subr.mxu1 %v1079_v11 }
  0x87   :  { %899 = vmatpush3.msra.mxu0 %v496_v62  ;;  %934 = vmatpush3.msra.mxu1 %v590_v15 }
  0x88   :  { %900 = vmatprep.subr.mxu0 %v1079_v11  ;;  %935 = vmatprep.subr.mxu1 %v1079_v11 }
  0x89   :  { %901 = vmatpush3.msra.mxu0 %v495_v63  ;;  %936 = vmatpush3.msra.mxu1 %v589_v16 }
  0x8a   :  { %902 = vmatprep.subr.mxu0 %v1079_v11  ;;  %937 = vmatprep.subr.mxu1 %v1079_v11 }
  0x8b   :  { %903 = vmatpush3.msra.mxu0 %v494_v0  ;;  %938 = vmatpush3.msra.mxu1 %v588_v17 }
  0x8c   :  { %904 = vmatprep.subr.mxu0 %v1079_v11  ;;  %939 = vmatprep.subr.mxu1 %v1079_v11 }
  0x8d   :  { %905 = vmatpush3.msra.mxu0 %v493_v1  ;;  %940 = vmatpush3.msra.mxu1 %v587_v18 }
  0x8e   :  { %906 = vmatprep.subr.mxu0 %v1079_v11  ;;  %941 = vmatprep.subr.mxu1 %v1079_v11 }
  0x8f   :  { %907 = vmatpush3.msra.mxu0 %v492_v2  ;;  %942 = vmatpush3.msra.mxu1 %v586_v19 }
  0x90   :  { %908 = vmatprep.subr.mxu0 %v1079_v11  ;;  %943 = vmatprep.subr.mxu1 %v1079_v11 }
  0x91   :  { %909 = vmatpush3.msra.mxu0 %v491_v3  ;;  %944 = vmatpush3.msra.mxu1 %v585_v20 }
  0x92   :  { %910 = vmatprep.subr.mxu0 %v1079_v11  ;;  %945 = vmatprep.subr.mxu1 %v1079_v11 }
  0x93   :  { %911 = vmatpush3.msra.mxu0 %v490_v4  ;;  %946 = vmatpush3.msra.mxu1 %v584_v21 }
  0x94   :  { %912 = vmatprep.subr.mxu0 %v1079_v11  ;;  %947 = vmatprep.subr.mxu1 %v1079_v11 }
  0x95   :  { %913 = vmatpush3.msra.mxu0 %v489_v5  ;;  %948 = vmatpush3.msra.mxu1 %v583_v39 }
  0x96   :  { %914 = vmatprep.subr.mxu0 %v1079_v11  ;;  %949 = vmatprep.subr.mxu1 %v1079_v11 }
  0x97   :  { %915 = vmatpush3.msra.mxu0 %v488_v6  ;;  %950 = vmatpush3.msra.mxu1 %v582_v40 }
  0x98   :  { %916 = vmatprep.subr.mxu0 %v1079_v11  ;;  %951 = vmatprep.subr.mxu1 %v1079_v11 }
  0x99   :  { %917 = vmatpush3.msra.mxu0 %v487_v7  ;;  %952 = vmatpush3.msra.mxu1 %v581_v41 }
 0x114   :  { %v727_v22 = vpop.f32.mrf.mxu0 }
 0x116   :  { %v728_v23 = vpop.f32.mrf.mxu0 }
 0x117   :  { %v762_v24 = vpop.f32.mrf.mxu1  ;;  %v729_v25 = vadd.f32 %v728_v23, %v727_v22 }
 0x119   :  { %v763_v27 = vpop.f32.mrf.mxu1  ;;  %v273_v28 = vadd.f32 %v729_v25, %v692_v26 }
 0x11a   :  { %v764_v29 = vadd.f32 %v763_v27, %v762_v24 }
 0x11c   :  { %v343_v32 = vadd.f32 %v764_v29, %v273_v28 }
 0x136   :  { %v797_v30 = vpop.f32.mrf.mxu0 }
 0x138   :  { %v798_v31 = vpop.f32.mrf.mxu0 }
 0x139   :  { %v799_v33 = vadd.f32 %v798_v31, %v797_v30  ;;  %v482_v34 = vpop.f32.mrf.mxu1 }
 0x13b   :  { %v413_v35 = vadd.f32 %v799_v33, %v343_v32  ;;  %v885_v36 = vpop.f32.mrf.mxu1 }
 0x13d   :  { %v483_v37 = vadd.f32 %v482_v34, %v413_v35 }
 0x13f   :  { %v486_v38 = vmax.f32 %v483_v37, 0.0 }
 0x141   :  { %919 = vmatmul.mubr.f32.vlgmr.msra.gmra.mxu0 %v486_v38 }
 0x201   :  { %v576_v43 = vpop.f32.mrf.mxu0 }
 0x202   :  { %v577_v44 = vadd.f32 %v693_v42, %v576_v43 }
 0x203   :  { %v920_v45 = vpop.f32.mrf.mxu0 }
 0x204   :  { %v580_v46 = vmax.f32 %v577_v44, 0.0 }
 0x206   :  { %954 = vmatmul.mubr.f32.vlgmr.msra.gmra.mxu1 %v580_v46 }
 0x2c6   :  { %v670_v48 = vpop.f32.mrf.mxu1 }
 0x2c7   :  { %v671_v49 = vadd.f32 %v694_v47, %v670_v48 }
 0x2c8   :  { %v955_v11 = vpop.f32.mrf.mxu1 }
 0x2c9   :  { %674 = vst [vmem:[#allocation10] sm:$0xff] %v671_v49 }
 0x2ca   :  { %1056 = shalt.err (!%p1053_p10)
}
 0x2cb   :  { %684 = dma.vmem_to_hbm [thread:$0]  %s682_s25, 128, %s1213_s7, [#allocation4]  }
 0x2cc   :  { %1071 = dma.done.wait [#allocation4], 128  }
 0x2cd   :  { %1072 = vsyncadd [#allocation4], 4294967168 }
 0x2ce   :  { %688 = vsyncpa [#allocation3], 1 }
 0x2cf   :  { %689 = vsyncpa [#allocation6], 1 }
 0x2d0   :  { %690 = vsyncpa [#allocation9], 1 }
 0x2d1   :  { %691 = vsyncpa [#allocation4], 1 }

</bundles_post_ra>
